<compile_context>
chip_gen: v6e
topology: v6e:2x2x1
jax: 0.10.0
libtpu: 0.0.40
codegen_flags: <defaults>
</compile_context>

<pallas_src>
import math

import jax
import jax.numpy as jnp
from jax.experimental import pallas as pl
from jax.experimental.pallas import tpu as pltpu


def make_sinusoidal_pe(d_model: int, max_len: int = 5000, dtype=jnp.float32):
    """Deterministic sinusoidal table, identical to the PyTorch __init__."""
    position = jnp.arange(0, max_len, dtype=jnp.float32)[:, None]            # (L, 1)
    div_term = jnp.exp(
        jnp.arange(0, d_model, 2, dtype=jnp.float32)
        * (-math.log(10000.0) / d_model)
    )                                                                         # (ceil(D/2),)
    angles = position * div_term                                              # (L, ceil(D/2))
    pe = jnp.zeros((max_len, d_model), dtype=jnp.float32)
    pe = pe.at[:, 0::2].set(jnp.sin(angles))
    pe = pe.at[:, 1::2].set(jnp.cos(angles[:, : d_model // 2]))               # safe for odd D
    return pe.astype(dtype)                                                   # (L, D)


def _pe_add_kernel(x_ref, pe_ref, o_ref):
    # x_ref / o_ref: (TR, TC) tiles (batch dim squeezed away); pe_ref: (TR, TC).
    o_ref[...] = x_ref[...] + pe_ref[...]


_MAX_TILE_BYTES = 4 * 1024 * 1024        # ~4 MiB tiles: x 2x4 + out 2x4 + pe 2x4 <= 24 MiB
_VMEM_LIMIT_BYTES = 48 * 1024 * 1024     # < 64 MiB v7x physical; overrides v5e 16 MiB default
_WIDTHS = (2048, 1024, 512, 256, 128)    # candidate lane-aligned canonical widths


def _choose_canonical(S: int, D: int, itemsize: int,
                      max_tile_bytes: int = _MAX_TILE_BYTES):
    """Canonical (R, C) view of the trailing (S, D) dims plus a (TR, TC) tile.

    Guarantees the BlockSpec constraint: TR is a multiple of the packed sublane
    count or the full extent; TC is a multiple of 128 or the full extent.
    """
    sub = max(1, 32 // itemsize)  # packed sublanes: 8 f32, 16 bf16, 32 int8/fp8
    N = S * D

    if D % 128 == 0:
        R, C = S, D
    else:
        R = C = None
        # Preferred: fully dense factorization (rows sublane-aligned too).
        for w in _WIDTHS:
            if N % w == 0 and (N // w) % sub == 0:
                R, C = N // w, w
                break
        if R is None:
            # Relaxed: lane-aligned width only; narrowest width maximizes rows.
            for w in reversed(_WIDTHS):
                if N % w == 0:
                    R, C = N // w, w
                    break
        if R is None:
            # No lane-aligned factorization at all: masked stores, still correct.
            R, C = S, D

    budget_elems = max(sub * 128, max_tile_bytes // itemsize)

    if C % 128 == 0:
        # Prefer full-width tiles (contiguous DMA); cap lanes only if a single
        # sublane-group row would already blow the budget.
        TC = min(C, max(128, ((budget_elems // sub) // 128) * 128))
    else:
        TC = C  # must be full extent when not lane-aligned

    TR = max(sub, ((budget_elems // TC) // sub) * sub)
    if TR >= R:
        TR = R  # full extent is always legal
    return R, C, TR, TC


@jax.jit
def positional_encoding_forward(x: jax.Array, pe_full: jax.Array) -> jax.Array:
    """x: (B, S, D);  pe_full: (max_len, D).  Returns x + pe[:S] (broadcast over B)."""
    B, S, D = x.shape
    dtype = x.dtype
    itemsize = jnp.dtype(dtype).itemsize

    R, C, TR, TC = _choose_canonical(S, D, itemsize)
    nR = pl.cdiv(R, TR)
    nC = pl.cdiv(C, TC)

    xc = x.reshape(B, R, C)  # row-major contiguous view (free)

    sub = max(1, 32 // itemsize)
    if (R, C) == (S, D) and TR % sub == 0:
        # Lane-aligned path with sublane-aligned row tiles: pass the whole pe
        # table untouched; the index_map only reads its first nR row blocks.
        pe_in = pe_full.astype(dtype)          # no-op when pe is stored in model dtype
    else:
        # Flattened canonical (or TR == R not sublane-aligned): materialize the
        # exact (R, C) slab so every block dim is a multiple or the full extent.
        pe_in = pe_full[:S].astype(dtype).reshape(R, C)

    # Batch innermost + "arbitrary": b iterates sequentially, so each pe tile is
    # fetched once per (r, c) and reused across the batch; megacore split goes
    # to the row/col axes.  Degenerate single-tile grids parallelize over B.
    batch_sem = "parallel" if nR * nC == 1 else "arbitrary"

    out = pl.pallas_call(
        _pe_add_kernel,
        out_shape=jax.ShapeDtypeStruct((B, R, C), dtype),
        grid_spec=pltpu.PrefetchScalarGridSpec(
            num_scalar_prefetch=0,
            grid=(nR, nC, B),
            in_specs=[
                pl.BlockSpec((pl.Squeezed(), TR, TC), lambda r, c, b: (b, r, c)),
                pl.BlockSpec((TR, TC), lambda r, c, b: (r, c)),
            ],
            out_specs=pl.BlockSpec((pl.Squeezed(), TR, TC), lambda r, c, b: (b, r, c)),
        ),
        compiler_params=pltpu.CompilerParams(
            dimension_semantics=("parallel", "parallel", batch_sem),
            vmem_limit_bytes=_VMEM_LIMIT_BYTES,
        ),
    )(xc, pe_in)

    return out.reshape(B, S, D)


if __name__ == "__main__":
    MAX_LEN = 5000
    key = jax.random.PRNGKey(0)
    k1, k2, k3 = jax.random.split(key, 3)

    # Case 1: module's demo-scale shape (D=32, not lane-aligned -> dense (R, 128) factorization).
    B, S, D = 2, 8, 32
    x = jax.random.normal(k1, (B, S, D), dtype=jnp.float32)
    pe_full = make_sinusoidal_pe(D, MAX_LEN, dtype=jnp.float32)
    out = jax.block_until_ready(positional_encoding_forward(x, pe_full))
    ref = x + pe_full[None, :S, :]
    assert out.shape == (B, S, D)
    assert jnp.allclose(out, ref, atol=1e-6), "mismatch vs reference (factorized path)"

    # Case 2: lane-aligned D=128 -> (S, D) canonical, whole pe table passed unsliced.
    B2, S2, D2 = 2, 16, 128
    x2 = jax.random.normal(k2, (B2, S2, D2), dtype=jnp.float32)
    pe_full2 = make_sinusoidal_pe(D2, MAX_LEN, dtype=jnp.float32)
    out2 = jax.block_until_ready(positional_encoding_forward(x2, pe_full2))
    ref2 = x2 + pe_full2[None, :S2, :]
    assert out2.shape == (B2, S2, D2)
    assert jnp.allclose(out2, ref2, atol=1e-6), "mismatch vs reference (aligned path)"

    # Case 3: bf16 with non-aligned D=96 -> sublane-aligned (48, 128) slab for packed dtype.
    B3, S3, D3 = 2, 64, 96
    x3 = jax.random.normal(k3, (B3, S3, D3), dtype=jnp.float32).astype(jnp.bfloat16)
    pe_full3 = make_sinusoidal_pe(D3, MAX_LEN, dtype=jnp.bfloat16)
    out3 = jax.block_until_ready(positional_encoding_forward(x3, pe_full3))
    ref3 = x3 + pe_full3[None, :S3, :]
    assert out3.shape == (B3, S3, D3)
    assert jnp.allclose(out3.astype(jnp.float32), ref3.astype(jnp.float32), atol=2e-2), \
        "mismatch vs reference (bf16 path)"

    print("KERNEL_OK")
</pallas_src>

<mosaic_0001>
module attributes {stable_mosaic.version = 11 : i64} {
  func.func @_pe_add_kernel(%arg0: i32, %arg1: i32, %arg2: i32, %arg3: memref<1x2x128xf32, #tpu.memory_space<vmem>>, %arg4: memref<2x128xf32, #tpu.memory_space<vmem>>, %arg5: memref<1x2x128xf32, #tpu.memory_space<vmem>>) attributes {dimension_semantics = [#tpu.dimension_semantics<parallel>, #tpu.dimension_semantics<parallel>, #tpu.dimension_semantics<parallel>], iteration_bounds = array<i64: 1, 1, 2>, scalar_prefetch = 0 : i64, scratch_operands = 0 : i64, tpu.core_type = #tpu.core_type<tc>, window_params = [{transform_indices = @transform_0, window_bounds = array<i64: 1, 2, 128>}, {transform_indices = @transform_1, window_bounds = array<i64: 2, 128>}, {transform_indices = @transform_2, window_bounds = array<i64: 1, 2, 128>}]} {
    %c0 = arith.constant 0 : index
    %c0_0 = arith.constant 0 : index
    %c0_1 = arith.constant 0 : index
    %0 = vector.load %arg3[%c0, %c0_0, %c0_1] : memref<1x2x128xf32, #tpu.memory_space<vmem>>, vector<1x2x128xf32>
    %1 = vector.shape_cast %0 : vector<1x2x128xf32> to vector<2x128xf32>
    %c0_2 = arith.constant 0 : index
    %c0_3 = arith.constant 0 : index
    %2 = vector.load %arg4[%c0_2, %c0_3] : memref<2x128xf32, #tpu.memory_space<vmem>>, vector<2x128xf32>
    %3 = arith.addf %1, %2 : vector<2x128xf32>
    %c0_4 = arith.constant 0 : index
    %c0_5 = arith.constant 0 : index
    %c0_6 = arith.constant 0 : index
    %4 = vector.load %arg5[%c0_4, %c0_5, %c0_6] : memref<1x2x128xf32, #tpu.memory_space<vmem>>, vector<1x2x128xf32>
    %5 = vector.shape_cast %4 : vector<1x2x128xf32> to vector<2x128xf32>
    %6 = vector.shape_cast %3 : vector<2x128xf32> to vector<1x2x128xf32>
    tpu.vector_store %arg5[%c0_4, %c0_5, %c0_6], %6 {strides = array<i32>} : memref<1x2x128xf32, #tpu.memory_space<vmem>>, vector<1x2x128xf32>,
    return
  }
  func.func @transform_0(%arg0: i32, %arg1: i32, %arg2: i32) -> (i32, i32, i32) {
    %c0_i32 = arith.constant 0 : i32
    return %arg2, %arg0, %arg1 : i32, i32, i32
  }
  func.func @transform_1(%arg0: i32, %arg1: i32, %arg2: i32) -> (i32, i32) {
    %c0_i32 = arith.constant 0 : i32
    return %arg0, %arg1 : i32, i32
  }
  func.func @transform_2(%arg0: i32, %arg1: i32, %arg2: i32) -> (i32, i32, i32) {
    %c0_i32 = arith.constant 0 : i32
    return %arg2, %arg0, %arg1 : i32, i32, i32
  }
}

</mosaic_0001>

<bundles_post_ra>
// kernel: positional_encoding_forward.1
= control target key start
LH: loop header
LB: loop body
LE: loop exit
PB: predicated region body
PF: predicated region fallthrough
CT: control target
= control target key end

     0   :  { %s410_s9 = smov 0   ;;  %s387_s10 = smov 0   ;;  %s424_s0 = inlined_call_operand.vmem [shape: f32[2,2,128], index: 0, kind: input, shape index: {}]   ;;  %s425_s1 = inlined_call_operand.vmem [shape: f32[2,128], index: 1, kind: input, shape index: {}]   ;;  %s426_s2 = inlined_call_operand.vmem [shape: f32[2,2,128], index: 2, kind: output, shape index: {}]  }
   0x1   :  { %s391_s11 = smov 0  }
   0x2 LB: > { %s24_s12 = sadd.s32 1, %s389_s10  ;;  %p342_p0 = scmp.ge.s32.totalorder %s393_s11, 1  ;;  %s393_s11 = sphi %s391_s11, %s12_s11   ;;  %s389_s10 = sphi %s387_s10, %s388_s10   ;;  %s385_s9 = sphi %s410_s9, %s427_s9  }
   0x3   : > { %p25_p1 = scmp.ge.s32.totalorder %s24_s12, 2  ;;  %p158_p2 = scmp.lt.s32.totalorder %s393_s11, 3 }
   0x5   : > { %s429_s12 = smov (%p25_p1, %s24_s12), 0  ;;  %p159_p3 = pnand %p342_p0, %p158_p2 }
   0x6   : > { %p197_p4 = scmp.lt.s32.totalorder (!%p159_p3), %s385_s9, 1 }
   0x7   : > { %162 = sbr.rel (%p159_p3) target bundleno = 19 (0x13), region = 28 }
   0xc   : > { %s431_s9 = smov (!%p197_p4, %s385_s9), 1  ;;  %v225_v0 = vld [vmem:[%s425_s1] sm:$0x3] }
   0xd   : > { %s343_s13 = sshll.u32 %s431_s9, 1 }
   0xe   : > { %s206_s18 = scalar_lea.vmem %s424_s0, %s343_s13  ;;  %s223_s21 = scalar_lea.vmem %s426_s2, %s343_s13 }
   0xf   : > { %v224_v1 = vld [vmem:[%s206_s18] sm:$0x3] }
  0x10   : > { %v226_v2 = vadd.f32 %v225_v0, %v224_v1 }
  0x12   : > { %227 = vst [vmem:[%s223_s21] sm:$0x3] %v226_v2 }
  0x13 PF: > { %s12_s11 = sadd.s32 1, %s393_s11   ;;  %s427_s9 = smov %s389_s10 }
  0x14   : > { %p9_p5 = scmp.ge.s32.totalorder %s12_s11, 4   ;;  %s388_s10 = smov %s429_s12  }
  0x16   :  { %11 = sbr.rel (!%p9_p5) target bundleno = 2 (0x2), region = 61 }

</bundles_post_ra>
